<compile_context>
chip_gen: v6e
topology: v6e:2x2x1
jax: 0.10.0
libtpu: 0.0.40
codegen_flags: <defaults>
</compile_context>

<pallas_src>
import jax
import jax.numpy as jnp
from jax.experimental import pallas as pl
from jax.experimental.pallas import tpu as pltpu


_LANE = 384   # lcm(128, 3): lane-dense, xyz phase pattern constant per row


# ----------------------------- glue (plain JAX) -----------------------------

def so3_exp(r):
    """Rodrigues formula: Exp(r) for r in R^3 -> SO(3). Safe at ||r|| -> 0."""
    r = jnp.asarray(r, jnp.float32)
    theta2 = jnp.sum(r * r)
    theta = jnp.sqrt(theta2)
    small = theta < 1e-6
    A = jnp.where(small, 1.0 - theta2 / 6.0,
                  jnp.sin(theta) / jnp.where(small, 1.0, theta))
    B = jnp.where(small, 0.5 - theta2 / 24.0,
                  (1.0 - jnp.cos(theta)) / jnp.where(small, 1.0, theta2))
    K = jnp.array([[0.0, -r[2], r[1]],
                   [r[2], 0.0, -r[0]],
                   [-r[1], r[0], 0.0]], dtype=jnp.float32)
    return jnp.eye(3, dtype=jnp.float32) + A * K + B * (K @ K)


def _compose_matrix(init_transform, R, T):
    """M = transform @ init_transform (4x4), tiny O(1) host-side glue."""
    transform = jnp.eye(4, dtype=jnp.float32)
    transform = transform.at[:3, :3].set(so3_exp(R))
    transform = transform.at[:3, 3].set(jnp.asarray(T, jnp.float32))
    return transform @ jnp.asarray(init_transform, jnp.float32)


def _phase_coefficients(M):
    """(6, 384) phase-coefficient lane vectors for the roll-based kernel.

    For flat position p with phase = p % 3 (0:x, 1:y, 2:z) the output is
        out[p] = sum_d coef[d][p] * v[p + offset_d] + t[p]
    with offsets (-2, -1, 0, +1, +2).  Lanes whose offset would wrap around a
    row edge always have a zero coefficient, so the rolls' wrap is harmless.
    """
    ph = jnp.arange(_LANE, dtype=jnp.int32) % 3

    def by_phase(c0, c1, c2):
        return jnp.where(ph == 0, c0, jnp.where(ph == 1, c1, c2))

    zero = jnp.float32(0.0)
    return jnp.stack([
        by_phase(zero,    zero,    M[2, 0]),   # w_m2: coeff of v[p-2]
        by_phase(zero,    M[1, 0], M[2, 1]),   # w_m1: coeff of v[p-1]
        by_phase(M[0, 0], M[1, 1], M[2, 2]),   # w_0 : coeff of v[p]
        by_phase(M[0, 1], M[1, 2], zero),      # w_p1: coeff of v[p+1]
        by_phase(M[0, 2], zero,    zero),      # w_p2: coeff of v[p+2]
        by_phase(M[0, 3], M[1, 3], M[2, 3]),   # t   : translation
    ]).astype(jnp.float32)


# ------------------------------ Pallas kernel -------------------------------

def _transform_kernel(coef_ref, pts_ref, out_ref):
    # coef_ref: (6, 384) f32, resident in VMEM (constant block index -> one DMA)
    # pts_ref : (TR, 384) tile of the flat interleaved x,y,z,... buffer
    # out_ref : (TR, 384), same dtype as the input cloud
    v = pts_ref[...].astype(jnp.float32)
    lane_axis = v.ndim - 1              # pltpu.roll requires a non-negative axis
    L = v.shape[lane_axis]

    # Neighbouring flat elements via lane rotation (XLU slot, not VALU).
    # roll(v, s)[..., p] == v[..., (p - s) % L];  L % 3 == 0 so no in-use wrap.
    vm1 = pltpu.roll(v, shift=1, axis=lane_axis)        # v[p-1]
    vm2 = pltpu.roll(v, shift=2, axis=lane_axis)        # v[p-2]
    vp1 = pltpu.roll(v, shift=L - 1, axis=lane_axis)    # v[p+1]
    vp2 = pltpu.roll(v, shift=L - 2, axis=lane_axis)    # v[p+2]

    w = coef_ref[...]                   # (6, 384); (1,384) slices broadcast over sublanes
    out = (w[0:1] * vm2 + w[1:2] * vm1 + w[2:3] * v
           + w[3:4] * vp1 + w[4:5] * vp2 + w[5:6])
    out_ref[...] = out.astype(out_ref.dtype)


# ------------------------------ tiling policy --------------------------------

def _round_up(a, b):
    return ((a + b - 1) // b) * b


def _tile_params():
    """(row_block, min_grid_steps, vmem_limit_bytes) per TPU generation."""
    kind, platform = "", ""
    try:
        d = jax.devices()[0]
        kind = (getattr(d, "device_kind", "") or "").lower()
        platform = d.platform
    except Exception:
        pass
    if platform != "tpu":
        return 1024, 1, None                       # interpret / non-TPU fallback
    if "v5 lite" in kind or "v5e" in kind or "v5lite" in kind:
        # v5e: 16 MiB default scoped VMEM and firmly HBM-bound -> small tiles.
        return 512, 1, None
    if "v7" in kind or "tpu7" in kind or "7x" in kind:
        # v7x: 64 MiB VMEM/TC, 2 TCs -> bigger tiles, split grid across cores.
        return 2048, 2, 40 * 1024 * 1024
    return 1024, 1, None                           # v6e / v5p / default


def _choose_tile(rows, row_block, min_grid):
    """Pick (tile_rows, grid) so blocks are (8,128)/(16,128)-legal and, on v7x,
    the 1-D parallel grid has at least `min_grid` reasonably balanced steps."""
    if rows <= row_block and min_grid <= 1:
        return rows, 1                             # full-extent single block
    want = max(min_grid, pl.cdiv(rows, row_block))
    tr = _round_up(pl.cdiv(rows, want), 16)        # 16 covers f32 and 16-bit tiling
    if tr >= rows:
        return rows, 1
    return tr, pl.cdiv(rows, tr)


# --------------------------------- wrapper -----------------------------------

_NATIVE_DTYPES = (jnp.dtype(jnp.float32), jnp.dtype(jnp.bfloat16), jnp.dtype(jnp.float16))


def transform_forward(xyzs_a, init_transform, R, T, *, row_block=None, min_grid=None):
    """Apply the Transform module forward pass via a Pallas TPU kernel."""
    orig_shape = xyzs_a.shape
    in_dtype = jnp.dtype(xyzs_a.dtype)
    buf_dtype = in_dtype if in_dtype in _NATIVE_DTYPES else jnp.dtype(jnp.float32)
    x = xyzs_a if in_dtype == buf_dtype else xyzs_a.astype(buf_dtype)

    # Tiny glue: compose M and build the (6, 384) phase-coefficient vectors.
    M = _compose_matrix(init_transform, R, T)
    coef = _phase_coefficients(M)

    flat = x.reshape(-1)
    n_flat = flat.shape[0]
    rows = n_flat // _LANE
    tail = n_flat - rows * _LANE

    rb, mg, vmem_limit = _tile_params()
    if row_block is not None:
        rb = row_block
    if min_grid is not None:
        mg = min_grid

    pieces = []
    if rows > 0:
        main = flat if tail == 0 else flat[: rows * _LANE]
        main = main.reshape(rows, _LANE)
        tr, grid = _choose_tile(rows, rb, mg)

        cp = dict(dimension_semantics=("parallel",))
        if vmem_limit is not None:
            cp["vmem_limit_bytes"] = vmem_limit

        out2d = pl.pallas_call(
            _transform_kernel,
            out_shape=jax.ShapeDtypeStruct((rows, _LANE), buf_dtype),
            grid_spec=pltpu.PrefetchScalarGridSpec(
                num_scalar_prefetch=0,
                grid=(grid,),
                in_specs=[
                    # resident coefficient vectors: same block every step
                    pl.BlockSpec((6, _LANE), lambda i: (0, 0)),
                    # streaming point tile
                    pl.BlockSpec((tr, _LANE), lambda i: (i, 0)),
                ],
                out_specs=pl.BlockSpec((tr, _LANE), lambda i: (i, 0)),
            ),
            compiler_params=pltpu.CompilerParams(**cp),
        )(coef, main)
        pieces.append(out2d.reshape(-1))

    if tail > 0:
        # Ragged tail (< 128 points): negligible work, plain JAX.  Avoids the
        # whole-buffer pad copy + output slice of the previous version.
        tail_pts = flat[rows * _LANE:].astype(jnp.float32).reshape(-1, 3)
        tail_out = tail_pts @ M[:3, :3].T + M[:3, 3]
        pieces.append(tail_out.reshape(-1).astype(buf_dtype))

    out_flat = pieces[0] if len(pieces) == 1 else jnp.concatenate(pieces)
    return out_flat.reshape(orig_shape).astype(in_dtype)


# ----------------------------- pure-JAX reference ----------------------------

def transform_reference(xyzs_a, init_transform, R, T):
    transform = jnp.eye(4, dtype=jnp.float32)
    transform = transform.at[:3, :3].set(so3_exp(R))
    transform = transform.at[:3, 3].set(jnp.asarray(T, jnp.float32))
    b = xyzs_a.astype(jnp.float32).reshape(-1, 3)
    b1 = jnp.concatenate([b, jnp.ones((b.shape[0], 1), jnp.float32)], axis=1)
    b2 = (jnp.asarray(init_transform, jnp.float32) @ b1.T).T
    b3 = (transform @ b2.T).T
    return b3[:, :3].reshape(xyzs_a.shape)


# ---------------------------------- driver -----------------------------------

if __name__ == "__main__":
    key = jax.random.PRNGKey(0)
    k_pts, k_init_r, k_init_t, k_R, k_T, k_pts2 = jax.random.split(key, 6)

    # Small point cloud: (2, 4, 16, 3) -> 128 points -> one 384-lane row.
    xyzs_a = jax.random.normal(k_pts, (2, 4, 16, 3), dtype=jnp.float32)

    # Deterministic init_transform: a rigid 4x4 (rotation + translation).
    init_rot = so3_exp(0.3 * jax.random.normal(k_init_r, (3,), dtype=jnp.float32))
    init_trans = jax.random.normal(k_init_t, (3,), dtype=jnp.float32)
    init_transform = jnp.eye(4, dtype=jnp.float32)
    init_transform = init_transform.at[:3, :3].set(init_rot)
    init_transform = init_transform.at[:3, 3].set(init_trans)

    # Module __init__ sets R, T to zeros; use small deterministic values to
    # exercise the Exp(R)/T path as well (they are trainable parameters).
    R = 0.1 * jax.random.normal(k_R, (3,), dtype=jnp.float32)
    T = 0.1 * jax.random.normal(k_T, (3,), dtype=jnp.float32)

    out = jax.block_until_ready(transform_forward(xyzs_a, init_transform, R, T))
    ref = transform_reference(xyzs_a, init_transform, R, T)
    assert out.shape == xyzs_a.shape and out.dtype == xyzs_a.dtype
    assert jnp.allclose(out, ref, atol=1e-5, rtol=1e-5), "mismatch vs reference"

    # Ragged point count (134 points): kernel on the 128-point body + JAX tail.
    xyzs_b = jax.random.normal(k_pts2, (2, 67, 3), dtype=jnp.float32)
    out_b = jax.block_until_ready(transform_forward(xyzs_b, init_transform, R, T))
    ref_b = transform_reference(xyzs_b, init_transform, R, T)
    assert jnp.allclose(out_b, ref_b, atol=1e-5, rtol=1e-5), "ragged mismatch"

    print("KERNEL_OK")
</pallas_src>

<mosaic_0001>
module attributes {stable_mosaic.version = 11 : i64} {
  func.func @_transform_kernel(%arg0: i32, %arg1: memref<6x384xf32, #tpu.memory_space<vmem>>, %arg2: memref<1x384xf32, #tpu.memory_space<vmem>>, %arg3: memref<1x384xf32, #tpu.memory_space<vmem>>) attributes {dimension_semantics = [#tpu.dimension_semantics<parallel>], iteration_bounds = array<i64: 1>, scalar_prefetch = 0 : i64, scratch_operands = 0 : i64, tpu.core_type = #tpu.core_type<tc>, window_params = [{pipeline_mode = #tpu.pipeline_mode<synchronous>, transform_indices = @transform_0, window_bounds = array<i64: 6, 384>}, {transform_indices = @transform_1, window_bounds = array<i64: 1, 384>}, {transform_indices = @transform_2, window_bounds = array<i64: 1, 384>}]} {
    %c0 = arith.constant 0 : index
    %c0_0 = arith.constant 0 : index
    %0 = vector.load %arg2[%c0, %c0_0] : memref<1x384xf32, #tpu.memory_space<vmem>>, vector<1x384xf32>
    %c1_i32 = arith.constant 1 : i32
    %1 = tpu.dynamic_rotate %0 by %c1_i32 dim 1 : vector<1x384xf32>, i32 -> vector<1x384xf32>
    %c2_i32 = arith.constant 2 : i32
    %2 = tpu.dynamic_rotate %0 by %c2_i32 dim 1 : vector<1x384xf32>, i32 -> vector<1x384xf32>
    %c383_i32 = arith.constant 383 : i32
    %3 = tpu.dynamic_rotate %0 by %c383_i32 dim 1 : vector<1x384xf32>, i32 -> vector<1x384xf32>
    %c382_i32 = arith.constant 382 : i32
    %4 = tpu.dynamic_rotate %0 by %c382_i32 dim 1 : vector<1x384xf32>, i32 -> vector<1x384xf32>
    %c0_1 = arith.constant 0 : index
    %c0_2 = arith.constant 0 : index
    %5 = vector.load %arg1[%c0_1, %c0_2] : memref<6x384xf32, #tpu.memory_space<vmem>>, vector<6x384xf32>
    %6 = vector.extract_strided_slice %5 {offsets = [0, 0], sizes = [1, 384], strides = [1, 1]} : vector<6x384xf32> to vector<1x384xf32>
    %7 = arith.mulf %6, %2 : vector<1x384xf32>
    %8 = vector.extract_strided_slice %5 {offsets = [1, 0], sizes = [1, 384], strides = [1, 1]} : vector<6x384xf32> to vector<1x384xf32>
    %9 = arith.mulf %8, %1 : vector<1x384xf32>
    %10 = arith.addf %7, %9 : vector<1x384xf32>
    %11 = vector.extract_strided_slice %5 {offsets = [2, 0], sizes = [1, 384], strides = [1, 1]} : vector<6x384xf32> to vector<1x384xf32>
    %12 = arith.mulf %11, %0 : vector<1x384xf32>
    %13 = arith.addf %10, %12 : vector<1x384xf32>
    %14 = vector.extract_strided_slice %5 {offsets = [3, 0], sizes = [1, 384], strides = [1, 1]} : vector<6x384xf32> to vector<1x384xf32>
    %15 = arith.mulf %14, %3 : vector<1x384xf32>
    %16 = arith.addf %13, %15 : vector<1x384xf32>
    %17 = vector.extract_strided_slice %5 {offsets = [4, 0], sizes = [1, 384], strides = [1, 1]} : vector<6x384xf32> to vector<1x384xf32>
    %18 = arith.mulf %17, %4 : vector<1x384xf32>
    %19 = arith.addf %16, %18 : vector<1x384xf32>
    %20 = vector.extract_strided_slice %5 {offsets = [5, 0], sizes = [1, 384], strides = [1, 1]} : vector<6x384xf32> to vector<1x384xf32>
    %21 = arith.addf %19, %20 : vector<1x384xf32>
    %c0_3 = arith.constant 0 : index
    %c0_4 = arith.constant 0 : index
    %22 = vector.load %arg3[%c0_3, %c0_4] : memref<1x384xf32, #tpu.memory_space<vmem>>, vector<1x384xf32>
    tpu.vector_store %arg3[%c0_3, %c0_4], %21 {strides = array<i32>} : memref<1x384xf32, #tpu.memory_space<vmem>>, vector<1x384xf32>,
    return
  }
  func.func @transform_0(%arg0: i32) -> (i32, i32) {
    %c0_i32 = arith.constant 0 : i32
    %c0_i32_0 = arith.constant 0 : i32
    %c0_i32_1 = arith.constant 0 : i32
    return %c0_i32, %c0_i32_0 : i32, i32
  }
  func.func @transform_1(%arg0: i32) -> (i32, i32) {
    %c0_i32 = arith.constant 0 : i32
    %c0_i32_0 = arith.constant 0 : i32
    return %arg0, %c0_i32 : i32, i32
  }
  func.func @transform_2(%arg0: i32) -> (i32, i32) {
    %c0_i32 = arith.constant 0 : i32
    %c0_i32_0 = arith.constant 0 : i32
    return %arg0, %c0_i32 : i32, i32
  }
}

</mosaic_0001>

<bundles_post_ra>
// kernel: tpu_custom_call.1
= control target key start
LH: loop header
LB: loop body
LE: loop exit
PB: predicated region body
PF: predicated region fallthrough
CT: control target
= control target key end

     0   :  { %7 = vsyncpa [#allocation3], 0  ;;  %s399_s0 = inlined_call_operand.hbm [shape: f32[6,384], index: 0, kind: input, shape index: {}]   ;;  %s400_s1 = inlined_call_operand.hbm [shape: f32[1,384], index: 1, kind: input, shape index: {}]   ;;  %s401_s2 = inlined_call_operand.hbm [shape: f32[1,384], index: 2, kind: output, shape index: {}]  }
   0x1   :  { %8 = vsyncpa [#allocation6], 0 }
   0x2   :  { %9 = vsyncpa [#allocation4], 0  ;;  %s322_s9 = smov [#allocation2]   ;;  %s323_s11 = smov [#allocation5]  }
   0x3   :  { %s16_s10 = sshll.u32 %s322_s9, 4  ;;  %s26_s12 = sshll.u32 %s323_s11, 4  ;;  %s17_s10 = int_to_ptr.vmem [resolvable:$true] %s16_s10  ;;  %s27_s12 = int_to_ptr.vmem [resolvable:$true] %s26_s12 }
   0x4   :  { %s264_s13 = scalar_lea.vmem %s17_s10, 384  ;;  %p269_p1 = scmp.lt.s32.totalorder %s17_s10, %s17_s10 }
   0x5   :  { %p265_p0 = scmp.ne.s32.totalorder %s17_s10, %s264_s13  ;;  %p270_p2 = scmp.lt.s32.totalorder %s264_s13, %s264_s13 }
   0x7   :  { %p271_p3 = por %p270_p2, %p269_p1 }
   0x9   :  { %p272_p4 = pnand %p271_p3, %p265_p0 }
   0xb   :  { %275 = shalt.err (!%p272_p4)
}
   0xc   :  { %19 = dma.hbm_to_vmem [thread:$0]  %s399_s0, 384, %s17_s10, [#allocation3]  }
   0xd   :  { %s284_s16 = scalar_lea.vmem %s27_s12, 48  ;;  %s288_s17 = scalar_lea.vmem %s27_s12, 64 }
   0xe   :  { %p285_p5 = scmp.ne.s32.totalorder %s27_s12, %s284_s16  ;;  %p289_p6 = scmp.lt.s32.totalorder %s27_s12, %s27_s12 }
   0xf   :  { %p290_p7 = scmp.lt.s32.totalorder %s288_s17, %s284_s16 }
  0x11   :  { %p291_p8 = por %p290_p7, %p289_p6 }
  0x13   :  { %p292_p9 = pnand %p291_p8, %p285_p5 }
  0x15   :  { %295 = shalt.err (!%p292_p9)
}
  0x16   :  { %29 = dma.hbm_to_vmem [thread:$0]  %s400_s1, 48, %s27_s12, [#allocation6]  }
  0x17   :  { %316 = dma.done.wait [#allocation3], 384  }
  0x18   :  { %317 = vsyncadd [#allocation3], 4294966912 }
  0x19   :  { %318 = dma.done.wait [#allocation6], 48  }
  0x1a   :  { %319 = vsyncadd [#allocation6], 4294967248  ;;  %v38_v0 = vlaneseq  ;;  %v36_v5 = vld [vmem:[#allocation5] sm:$0x7]  ;;  %s324_s0 = smov 1   ;;  %s325_s1 = smov 2  }
  0x1b   :  { %s326_s20 = smov 127   ;;  %s327_s21 = smov 126   ;;  %v361_v13 = vld [vmem:[#allocation2] sm:$0x3f]  ;;  %v363_v15 = vld [vmem:[#allocation2 + $0x8] sm:$0x3f] }
  0x1c   :  { %v352_v1 = vshrl.u32 %v38_v0, 7  ;;  %v358_v9 = vand.u32 127, %v38_v0  ;;  %v368_v21 = vld [vmem:[#allocation2 + $0x10] sm:$0x3f]  ;;  %v328_v61 = vmov 1966171168  }
  0x1d   :  { %v205_v62 = vunpack.c.l.s4 %v328_v61  ;;  %s329_s22 = smov [#allocation7]   ;;  %vm229_vm4 = vcmp.lt.s32.totalorder %v38_v0, 384 }
  0x1e   :  { %v48_v2 = vsub.s32 2, %v352_v1  ;;  %v40_v3 = vsub.s32 0, %v352_v1  ;;  %v44_v4 = vsub.s32 1, %v352_v1  ;;  %vm61_vm0 = vcmp.lt.s32.totalorder %v358_v9, 1  ;;  %s238_s23 = sshll.u32 %s329_s22, 4  ;;  %s239_s23 = int_to_ptr.vmem [resolvable:$true] %s238_s23 }
  0x1f   :  { %vm71_vm1 = vcmp.lt.s32.totalorder %v358_v9, 2  ;;  %vm81_vm2 = vcmp.lt.s32.totalorder %v358_v9, 127  ;;  %vm91_vm3 = vcmp.lt.s32.totalorder %v358_v9, 126  ;;  %s296_s24 = scalar_lea.vmem %s239_s23, 48  ;;  %s300_s25 = scalar_lea.vmem %s239_s23, 64 }
  0x20   :  { %v49_v6 = vrot.slane %v36_v5, %v48_v2  ;;  %v41_v7 = vrot.slane %v36_v5, %v40_v3  ;;  %v45_v8 = vrot.slane %v36_v5, %v44_v4  ;;  %p297_p10 = scmp.ne.s32.totalorder %s239_s23, %s296_s24  ;;  %p301_p11 = scmp.lt.s32.totalorder %s239_s23, %s239_s23 }
  0x21   :  { %p302_p12 = scmp.lt.s32.totalorder %s300_s25, %s296_s24 }
  0x22   :  { %57 = vrot.lane.b32.xlu1 %v49_v6, %s324_s0  ;;  %53 = vrot.lane.b32.xlu0 %v41_v7, %s324_s0  ;;  %v125_v18 = vmul.f32 %v361_v13, %v41_v7  ;;  %v126_v19 = vmul.f32 %v363_v15, %v45_v8  ;;  %v127_v26 = vmul.f32 %v368_v21, %v49_v6 }
  0x23   :  { %p303_p13 = por %p302_p12, %p301_p11 }
  0x24   :  { %v131_v30 = vrot.slane %v125_v18, 2  ;;  %v132_v31 = vrot.slane %v126_v19, 2  ;;  %v133_v41 = vrot.slane %v127_v26, 2 }
  0x25   :  { %p304_p0 = pnand %p303_p13, %p297_p10 }
  0x26   :  { %65 = vrot.lane.b32.xlu1 %v41_v7, %s325_s1  ;;  %55 = vrot.lane.b32.xlu0 %v45_v8, %s324_s0 }
  0x2a   :  { %69 = vrot.lane.b32.xlu1 %v49_v6, %s325_s1  ;;  %67 = vrot.lane.b32.xlu0 %v45_v8, %s325_s1 }
  0x2e   :  { %77 = vrot.lane.b32.xlu1 %v45_v8, %s326_s20  ;;  %75 = vrot.lane.b32.xlu0 %v41_v7, %s326_s20 }
  0x32   :  { %85 = vrot.lane.b32.xlu1 %v41_v7, %s327_s21  ;;  %79 = vrot.lane.b32.xlu0 %v49_v6, %s326_s20 }
  0x36   :  { %89 = vrot.lane.b32.xlu1 %v49_v6, %s327_s21  ;;  %87 = vrot.lane.b32.xlu0 %v45_v8, %s327_s21 }
  0x94   :  { %v58_v10 = vpop.permute.xlu1 %57  ;;  %v54_v11 = vpop.permute.xlu0 %53 }
  0x95   :  { %v64_v12 = vsel %vm61_vm0, %v58_v10, %v54_v11 }
  0x96   :  { %v104_v14 = vrot.slane %v64_v12, 7 }
  0x98   :  { %v66_v16 = vpop.permute.xlu1 %65  ;;  %v56_v17 = vpop.permute.xlu0 %55  ;;  %v110_v20 = vmul.f32 %v104_v14, %v361_v13 }
  0x99   :  { %v62_v22 = vsel %vm61_vm0, %v56_v17, %v58_v10  ;;  %v63_v23 = vsel %vm61_vm0, %v54_v11, %v56_v17  ;;  %v206_v17 = vunpack.c.0.s8 %v205_v62 }
  0x9a   :  { %v105_v24 = vrot.slane %v63_v23, 7  ;;  %v106_v25 = vrot.slane %v62_v22, 7  ;;  %v116_v33 = vrot.slane %v110_v20, 1  ;;  %v193_v23 = vrot.slane %v368_v21, 5 }
  0x9c   :  { %v111_v27 = vmul.f32 %v105_v24, %v363_v15  ;;  %v112_v28 = vmul.f32 %v106_v25, %v368_v21  ;;  %v70_v29 = vpop.permute.xlu1 %69  ;;  %v68_v32 = vpop.permute.xlu0 %67  ;;  %v191_v25 = vrot.slane %v361_v13, 5 }
  0x9d   :  { %v74_v34 = vsel %vm71_vm1, %v70_v29, %v66_v16  ;;  %v72_v35 = vsel %vm71_vm1, %v68_v32, %v70_v29  ;;  %v73_v36 = vsel %vm71_vm1, %v66_v16, %v68_v32 }
  0x9e   :  { %v117_v37 = vrot.slane %v111_v27, 1  ;;  %v118_v38 = vrot.slane %v112_v28, 1  ;;  %v98_v39 = vmul.f32 %v361_v13, %v74_v34  ;;  %v99_v40 = vmul.f32 %v363_v15, %v73_v36 }
  0x9f   :  { %v100_v42 = vmul.f32 %v368_v21, %v72_v35  ;;  %v192_v27 = vrot.slane %v363_v15, 5 }
  0xa0   :  { %v122_v43 = vadd.f32 %v116_v33, %v98_v39  ;;  %v123_v44 = vadd.f32 %v117_v37, %v99_v40  ;;  %v78_v45 = vpop.permute.xlu1 %77  ;;  %v76_v46 = vpop.permute.xlu0 %75 }
  0xa1   :  { %v124_v47 = vadd.f32 %v118_v38, %v100_v42  ;;  %v83_v48 = vsel %vm81_vm2, %v76_v46, %v78_v45 }
  0xa2   :  { %v137_v49 = vadd.f32 %v131_v30, %v122_v43  ;;  %v138_v50 = vadd.f32 %v132_v31, %v123_v44  ;;  %v143_v51 = vrot.slane %v83_v48, 5  ;;  %v209_v31 = vsub.s32 %v206_v17, %v352_v1 }
  0xa3   :  { %v139_v52 = vadd.f32 %v133_v41, %v124_v47 }
  0xa4   :  { %v149_v53 = vmul.f32 %v143_v51, %v361_v13  ;;  %v86_v54 = vpop.permute.xlu1 %85  ;;  %v80_v55 = vpop.permute.xlu0 %79 }
  0xa5   :  { %v82_v56 = vsel %vm81_vm2, %v78_v45, %v80_v55  ;;  %v84_v57 = vsel %vm81_vm2, %v80_v55, %v76_v46 }
  0xa6   :  { %v155_v58 = vrot.slane %v149_v53, 3  ;;  %v144_v59 = vrot.slane %v82_v56, 5  ;;  %v145_v60 = vrot.slane %v84_v57, 5 }
  0xa8   :  { %v161_v63 = vadd.f32 %v155_v58, %v137_v49  ;;  %v150_v2 = vmul.f32 %v144_v59, %v363_v15  ;;  %v151_v3 = vmul.f32 %v145_v60, %v368_v21  ;;  %v90_v4 = vpop.permute.xlu1 %89  ;;  %v88_v5 = vpop.permute.xlu0 %87 }
  0xa9   :  { %v94_v6 = vsel %vm91_vm3, %v90_v4, %v86_v54  ;;  %v92_v7 = vsel %vm91_vm3, %v88_v5, %v90_v4  ;;  %v93_v8 = vsel %vm91_vm3, %v86_v54, %v88_v5 }
  0xaa   :  { %v156_v10 = vrot.slane %v150_v2, 3  ;;  %v157_v11 = vrot.slane %v151_v3, 3  ;;  %v169_v12 = vrot.slane %v94_v6, 4  ;;  %v167_v14 = vrot.slane %v93_v8, 4 }
  0xab   :  { %v168_v16 = vrot.slane %v92_v7, 4 }
  0xac   :  { %v162_v18 = vadd.f32 %v156_v10, %v138_v50  ;;  %v163_v9 = vadd.f32 %v157_v11, %v139_v52  ;;  %v175_v19 = vmul.f32 %v169_v12, %v368_v21  ;;  %v173_v20 = vmul.f32 %v167_v14, %v361_v13 }
  0xad   :  { %v174_v22 = vmul.f32 %v168_v16, %v363_v15 }
  0xae   :  { %v181_v24 = vrot.slane %v175_v19, 4  ;;  %v179_v26 = vrot.slane %v173_v20, 4 }
  0xaf   :  { %v180_v28 = vrot.slane %v174_v22, 4 }
  0xb0   :  { %v187_v29 = vadd.f32 %v181_v24, %v163_v9  ;;  %v185_v30 = vadd.f32 %v179_v26, %v161_v63 }
  0xb1   :  { %v186_v32 = vadd.f32 %v180_v28, %v162_v18 }
  0xb2   :  { %v199_v33 = vadd.f32 %v193_v23, %v187_v29  ;;  %v197_v34 = vadd.f32 %v191_v25, %v185_v30 }
  0xb3   :  { %v198_v35 = vadd.f32 %v192_v27, %v186_v32 }
  0xb4   :  { %v217_v36 = vrot.slane %v199_v33, %v209_v31 }
  0xb5   :  { %v203_v37 = vcombine.low %v197_v34, %v198_v35 }
  0xb7   :  { %v210_v38 = vrot.slane %v203_v37, %v209_v31 }
  0xb9   :  { %v218_v21 = vcombine.low %v210_v38, %v217_v36 }
  0xbb   :  { %v225_v13 = vrot.slane %v218_v21, %v209_v31 }
  0xbd   :  { %231 = vst.msk [vmem:[#allocation7] sm:$0x7] %vm229_vm4, %v225_v13 }
  0xbe   :  { %307 = shalt.err (!%p304_p0)
}
  0xbf   :  { %241 = dma.vmem_to_hbm [thread:$0]  %s239_s23, 48, %s401_s2, [#allocation4]  }
  0xc0   :  { %320 = dma.done.wait [#allocation4], 48  }
  0xc1   :  { %321 = vsyncadd [#allocation4], 4294967248 }
  0xc2   :  { %245 = vsyncpa [#allocation3], 1 }
  0xc3   :  { %246 = vsyncpa [#allocation6], 1 }
  0xc4   :  { %247 = vsyncpa [#allocation4], 1 }

</bundles_post_ra>
